<compile_context>
chip_gen: v5e
topology: v5e:2x2
jax: 0.10.0
libtpu: 0.0.40
codegen_flags: <defaults>
</compile_context>

<pallas_src>
from typing import NamedTuple

import jax
import jax.numpy as jnp
from jax import lax
from jax.experimental import pallas as pl
from jax.experimental.pallas import tpu as pltpu


def _round_up(x, m):
    return ((x + m - 1) // m) * m


class EmbeddingWeights(NamedTuple):
    w_slab_t: jax.Array      # (lane, K_total): fused + bias-folded + lane-placed, transposed
    vpads: tuple             # per-feature padded vocab sizes (static Python ints)
    num_feats: int
    emb_dim: int             # D
    pack: int                # logical rows folded into one 128-lane output row
    lane: int                # pack * D


def prepare_embedding_weights(tables, w_mlp, b_mlp):
    """One-time (model-init) preprocessing.

    Folds the merge-MLP weight into each embedding table
    (Linear(concat(e_0..e_{F-1})) == sum_f e_f @ W[f*D:(f+1)*D, :]), folds the
    bias into the feature-0 table, lane-places one copy per packing slot and
    concatenates everything along the contraction (vocab) axis.  Cache the
    result; do NOT rebuild it every forward step."""
    F = len(tables)
    D = tables[0].shape[1]
    # pack > 1 requires D | 128; otherwise fall back to pack=1 (still correct,
    # but the output is no longer lane-dense -> masked partial stores).
    pack = 128 // D if 128 % D == 0 else 1
    lane = pack * D
    hi = lax.Precision.HIGHEST

    segs, vpads = [], []
    for f in range(F):
        fused = jnp.dot(tables[f].astype(jnp.float32),
                        w_mlp[f * D:(f + 1) * D, :].astype(jnp.float32),
                        precision=hi)                          # (V_f, D)
        if f == 0:
            fused = fused + b_mlp.reshape(1, D)                # bias, once per row
        V = fused.shape[0]
        Vp = _round_up(max(V, 8), 8)                           # sublane-aligned vocab
        fused_pad = jnp.zeros((Vp, D), jnp.float32).at[:V, :].set(fused)
        vpads.append(Vp)
        for p in range(pack):                                  # lane placement per slot
            placed = jnp.zeros((Vp, lane), jnp.float32)
            placed = placed.at[:, p * D:(p + 1) * D].set(fused_pad)
            segs.append(placed)
    w_slab = jnp.concatenate(segs, axis=0)                     # (K_total, lane)
    w_slab_t = jnp.asarray(w_slab.T)                           # (lane, K_total)

    return EmbeddingWeights(w_slab_t=w_slab_t, vpads=tuple(int(v) for v in vpads),
                            num_feats=F, emb_dim=D, pack=pack, lane=lane)


def _make_kernel(num_feats, pack, vpads):
    """Kernel: build the (K_total, R) one-hot slab (one iota per feature,
    8-aligned segment writes), issue one canonical MXU dot against the
    resident transposed table slab, ReLU + transpose the small result,
    store a lane-dense (R, lane) tile."""

    def kernel(idx_ref, wt_ref, o_ref, oh_ref):
        # idx_ref: (F*pack, R) int32 -- row f*pack+p holds the feature-f ids of
        #                               logical rows r*pack+p of this tile
        # wt_ref : (lane, K_total)   -- transposed fused-table slab (resident)
        # o_ref  : (R, lane)         -- packed lane-dense output tile
        # oh_ref : (K_total, R)      -- one-hot scratch (RHS of the single dot)
        r = o_ref.shape[0]
        off = 0
        for f in range(num_feats):
            vp = vpads[f]
            # One iota per feature per tile (hoisted out of the slot loop).
            iota_f = lax.broadcasted_iota(jnp.int32, (vp, r), 0)
            for p in range(pack):
                ids = idx_ref[f * pack + p:f * pack + p + 1, :]      # (1, R)
                oh_ref[off:off + vp, :] = (iota_f == ids).astype(jnp.float32)
                off += vp
        # Single (M,K)x(K,N) matmul; the MXU accumulates over the whole
        # contraction axis internally (no per-segment accumulator adds).
        out_t = lax.dot_general(wt_ref[...], oh_ref[...],
                                (((1,), (0,)), ((), ())),
                                preferred_element_type=jnp.float32)  # (lane, R)
        # ReLU + transpose of the small result tile (XLU slot), lane-dense store.
        o_ref[...] = jnp.transpose(jnp.maximum(out_t, 0.0))

    return kernel


def embeddings_forward(tokens, weights: EmbeddingWeights, *, tile_rows=2048):
    """tokens: (L, B, F) integer ids.  Returns (L, B, D) float32."""
    L, B, F = tokens.shape
    assert F == weights.num_feats
    D, pack, lane = weights.emb_dim, weights.pack, weights.lane
    k_total = int(weights.w_slab_t.shape[1])
    N = L * B

    # Row tiling: tn is always a multiple of pack*128 so the idx / output
    # blocks and the in-kernel transpose are (8,128)-aligned.  For N > pack*128
    # force at least two tiles so the parallel axis can use both TensorCores
    # on v7x (no-op on v5e/v6e).
    unit = pack * 128
    if N <= unit:
        tn = unit
    else:
        tn = min(_round_up(tile_rows, unit), _round_up((N + 1) // 2, unit))
    n_pad = _round_up(N, tn)
    rows_packed = tn // pack                   # R: packed rows per tile
    s_total = n_pad // pack

    # Index arrangement: row f*pack+p, column s holds the feature-f id of
    # logical row s*pack+p.  Padding rows use id 0 (always a valid row).
    idx = tokens.reshape(N, F).astype(jnp.int32)
    idx = jnp.pad(idx, ((0, n_pad - N), (0, 0)))
    idx_arr = (idx.reshape(s_total, pack, F)
               .transpose(2, 1, 0)
               .reshape(F * pack, s_total))

    kernel = _make_kernel(F, pack, weights.vpads)

    out_packed = pl.pallas_call(
        kernel,
        grid=(n_pad // tn,),
        in_specs=[
            pl.BlockSpec((F * pack, rows_packed), lambda i: (0, i)),
            pl.BlockSpec((lane, k_total), lambda i: (0, 0)),   # VMEM-resident slab
        ],
        out_specs=pl.BlockSpec((rows_packed, lane), lambda i: (i, 0)),
        out_shape=jax.ShapeDtypeStruct((s_total, lane), jnp.float32),
        scratch_shapes=[pltpu.VMEM((k_total, rows_packed), jnp.float32)],
        compiler_params=pltpu.CompilerParams(
            dimension_semantics=("parallel",)),    # row tiles are independent
    )(idx_arr, weights.w_slab_t)

    # (s_total, pack*D) row-major is bit-identical to (n_pad, D) row-major.
    out = out_packed.reshape(n_pad, D)[:N]
    return out.reshape(L, B, D)


def embeddings_reference(tokens, tables, w_mlp, b_mlp):
    """Pure-JAX reference matching the PyTorch module semantics."""
    embs = [jnp.take(t, tokens[..., f], axis=0) for f, t in enumerate(tables)]
    cat = jnp.concatenate(embs, axis=-1)                  # (L, B, F*D)
    y = jnp.dot(cat, w_mlp, precision=lax.Precision.HIGHEST) + b_mlp[0]
    return jnp.maximum(y, 0.0)


if __name__ == "__main__":
    key = jax.random.PRNGKey(0)

    # Small shapes consistent with the module: seq=8, batch=2, hidden=32,
    # 1 word feature + 2 extra features (MeanEncoder drops the last 2 src
    # columns before the embedding lookup; `tokens` here is the post-drop src).
    L, B, D = 8, 2, 32
    word_vocab, word_pad = 50, 0
    feat_vocabs = [20, 30]
    feat_pads = [0, 0]

    vocab_sizes = [word_vocab] + feat_vocabs
    pad_indices = [word_pad] + feat_pads
    F = len(vocab_sizes)

    keys = jax.random.split(key, F + 2 + F)

    # nn.Embedding tables (padding_idx row zeroed), deterministic init.
    tables = []
    for i, (v, p) in enumerate(zip(vocab_sizes, pad_indices)):
        t = 0.1 * jax.random.normal(keys[i], (v, D), dtype=jnp.float32)
        t = t.at[p].set(0.0)
        tables.append(t)

    # merge MLP: Linear(F*D -> D) + ReLU.
    in_dim = F * D
    w_mlp = 0.1 * jax.random.normal(keys[F], (in_dim, D), dtype=jnp.float32)
    b_mlp = 0.1 * jax.random.normal(keys[F + 1], (1, D), dtype=jnp.float32)

    # Token indices: (L, B, F), each feature sampled within its own vocab.
    cols = []
    for f in range(F):
        cols.append(jax.random.randint(keys[F + 2 + f], (L, B), 0,
                                       vocab_sizes[f], dtype=jnp.int32))
    tokens = jnp.stack(cols, axis=2)                      # (L, B, F)

    # One-time weight preprocessing (cached outside the per-step path).
    prep = prepare_embedding_weights(tables, w_mlp, b_mlp)
    prep = jax.tree_util.tree_map(
        lambda x: jax.block_until_ready(x) if isinstance(x, jax.Array) else x, prep)

    out = embeddings_forward(tokens, prep)
    out = jax.block_until_ready(out)

    ref = embeddings_reference(tokens, tables, w_mlp, b_mlp)
    assert out.shape == (L, B, D)
    assert jnp.allclose(out, ref, atol=1e-5, rtol=1e-5), "mismatch vs reference"

    print("KERNEL_OK")
</pallas_src>

<mosaic_0001>
module attributes {stable_mosaic.version = 11 : i64} {
  func.func @kernel(%arg0: i32, %arg1: memref<12x128xi32, #tpu.memory_space<vmem>>, %arg2: memref<128x448xf32, #tpu.memory_space<vmem>>, %arg3: memref<128x128xf32, #tpu.memory_space<vmem>>, %arg4: memref<448x128xf32, #tpu.memory_space<vmem>>) attributes {dimension_semantics = [#tpu.dimension_semantics<parallel>], iteration_bounds = array<i64: 1>, scalar_prefetch = 0 : i64, scratch_operands = 1 : i64, tpu.core_type = #tpu.core_type<tc>, window_params = [{transform_indices = @transform_0, window_bounds = array<i64: 12, 128>}, {pipeline_mode = #tpu.pipeline_mode<synchronous>, transform_indices = @transform_1, window_bounds = array<i64: 128, 448>}, {transform_indices = @transform_2, window_bounds = array<i64: 128, 128>}]} {
    %0 = tpu.iota {dimensions = array<i32: 0>} : vector<56x128xi32>
    %c0 = arith.constant 0 : index
    %c0_0 = arith.constant 0 : index
    %1 = vector.load %arg1[%c0, %c0_0] : memref<12x128xi32, #tpu.memory_space<vmem>>, vector<1x128xi32>
    %2 = vector.broadcast %1 : vector<1x128xi32> to vector<56x128xi32>
    %3 = arith.cmpi eq, %0, %2 : vector<56x128xi32>
    %4 = arith.extui %3 : vector<56x128xi1> to vector<56x128xi32>
    %5 = arith.sitofp %4 : vector<56x128xi32> to vector<56x128xf32>
    %c0_1 = arith.constant 0 : index
    %c0_2 = arith.constant 0 : index
    %6 = vector.load %arg4[%c0_1, %c0_2] : memref<448x128xf32, #tpu.memory_space<vmem>>, vector<56x128xf32>
    tpu.vector_store %arg4[%c0_1, %c0_2], %5 {strides = array<i32>} : memref<448x128xf32, #tpu.memory_space<vmem>>, vector<56x128xf32>,
    %c1 = arith.constant 1 : index
    %c0_3 = arith.constant 0 : index
    %7 = vector.load %arg1[%c1, %c0_3] : memref<12x128xi32, #tpu.memory_space<vmem>>, vector<1x128xi32>
    %8 = vector.broadcast %7 : vector<1x128xi32> to vector<56x128xi32>
    %9 = arith.cmpi eq, %0, %8 : vector<56x128xi32>
    %10 = arith.extui %9 : vector<56x128xi1> to vector<56x128xi32>
    %11 = arith.sitofp %10 : vector<56x128xi32> to vector<56x128xf32>
    %c56 = arith.constant 56 : index
    %c0_4 = arith.constant 0 : index
    %12 = vector.load %arg4[%c56, %c0_4] : memref<448x128xf32, #tpu.memory_space<vmem>>, vector<56x128xf32>
    tpu.vector_store %arg4[%c56, %c0_4], %11 {strides = array<i32>} : memref<448x128xf32, #tpu.memory_space<vmem>>, vector<56x128xf32>,
    %c2 = arith.constant 2 : index
    %c0_5 = arith.constant 0 : index
    %13 = vector.load %arg1[%c2, %c0_5] : memref<12x128xi32, #tpu.memory_space<vmem>>, vector<1x128xi32>
    %14 = vector.broadcast %13 : vector<1x128xi32> to vector<56x128xi32>
    %15 = arith.cmpi eq, %0, %14 : vector<56x128xi32>
    %16 = arith.extui %15 : vector<56x128xi1> to vector<56x128xi32>
    %17 = arith.sitofp %16 : vector<56x128xi32> to vector<56x128xf32>
    %c112 = arith.constant 112 : index
    %c0_6 = arith.constant 0 : index
    %18 = vector.load %arg4[%c112, %c0_6] : memref<448x128xf32, #tpu.memory_space<vmem>>, vector<56x128xf32>
    tpu.vector_store %arg4[%c112, %c0_6], %17 {strides = array<i32>} : memref<448x128xf32, #tpu.memory_space<vmem>>, vector<56x128xf32>,
    %c3 = arith.constant 3 : index
    %c0_7 = arith.constant 0 : index
    %19 = vector.load %arg1[%c3, %c0_7] : memref<12x128xi32, #tpu.memory_space<vmem>>, vector<1x128xi32>
    %20 = vector.broadcast %19 : vector<1x128xi32> to vector<56x128xi32>
    %21 = arith.cmpi eq, %0, %20 : vector<56x128xi32>
    %22 = arith.extui %21 : vector<56x128xi1> to vector<56x128xi32>
    %23 = arith.sitofp %22 : vector<56x128xi32> to vector<56x128xf32>
    %c168 = arith.constant 168 : index
    %c0_8 = arith.constant 0 : index
    %24 = vector.load %arg4[%c168, %c0_8] : memref<448x128xf32, #tpu.memory_space<vmem>>, vector<56x128xf32>
    tpu.vector_store %arg4[%c168, %c0_8], %23 {strides = array<i32>} : memref<448x128xf32, #tpu.memory_space<vmem>>, vector<56x128xf32>,
    %25 = tpu.iota {dimensions = array<i32: 0>} : vector<24x128xi32>
    %c4 = arith.constant 4 : index
    %c0_9 = arith.constant 0 : index
    %26 = vector.load %arg1[%c4, %c0_9] : memref<12x128xi32, #tpu.memory_space<vmem>>, vector<1x128xi32>
    %27 = vector.broadcast %26 : vector<1x128xi32> to vector<24x128xi32>
    %28 = arith.cmpi eq, %25, %27 : vector<24x128xi32>
    %29 = arith.extui %28 : vector<24x128xi1> to vector<24x128xi32>
    %30 = arith.sitofp %29 : vector<24x128xi32> to vector<24x128xf32>
    %c224 = arith.constant 224 : index
    %c0_10 = arith.constant 0 : index
    %31 = vector.load %arg4[%c224, %c0_10] : memref<448x128xf32, #tpu.memory_space<vmem>>, vector<24x128xf32>
    tpu.vector_store %arg4[%c224, %c0_10], %30 {strides = array<i32>} : memref<448x128xf32, #tpu.memory_space<vmem>>, vector<24x128xf32>,
    %c5 = arith.constant 5 : index
    %c0_11 = arith.constant 0 : index
    %32 = vector.load %arg1[%c5, %c0_11] : memref<12x128xi32, #tpu.memory_space<vmem>>, vector<1x128xi32>
    %33 = vector.broadcast %32 : vector<1x128xi32> to vector<24x128xi32>
    %34 = arith.cmpi eq, %25, %33 : vector<24x128xi32>
    %35 = arith.extui %34 : vector<24x128xi1> to vector<24x128xi32>
    %36 = arith.sitofp %35 : vector<24x128xi32> to vector<24x128xf32>
    %c248 = arith.constant 248 : index
    %c0_12 = arith.constant 0 : index
    %37 = vector.load %arg4[%c248, %c0_12] : memref<448x128xf32, #tpu.memory_space<vmem>>, vector<24x128xf32>
    tpu.vector_store %arg4[%c248, %c0_12], %36 {strides = array<i32>} : memref<448x128xf32, #tpu.memory_space<vmem>>, vector<24x128xf32>,
    %c6 = arith.constant 6 : index
    %c0_13 = arith.constant 0 : index
    %38 = vector.load %arg1[%c6, %c0_13] : memref<12x128xi32, #tpu.memory_space<vmem>>, vector<1x128xi32>
    %39 = vector.broadcast %38 : vector<1x128xi32> to vector<24x128xi32>
    %40 = arith.cmpi eq, %25, %39 : vector<24x128xi32>
    %41 = arith.extui %40 : vector<24x128xi1> to vector<24x128xi32>
    %42 = arith.sitofp %41 : vector<24x128xi32> to vector<24x128xf32>
    %c272 = arith.constant 272 : index
    %c0_14 = arith.constant 0 : index
    %43 = vector.load %arg4[%c272, %c0_14] : memref<448x128xf32, #tpu.memory_space<vmem>>, vector<24x128xf32>
    tpu.vector_store %arg4[%c272, %c0_14], %42 {strides = array<i32>} : memref<448x128xf32, #tpu.memory_space<vmem>>, vector<24x128xf32>,
    %c7 = arith.constant 7 : index
    %c0_15 = arith.constant 0 : index
    %44 = vector.load %arg1[%c7, %c0_15] : memref<12x128xi32, #tpu.memory_space<vmem>>, vector<1x128xi32>
    %45 = vector.broadcast %44 : vector<1x128xi32> to vector<24x128xi32>
    %46 = arith.cmpi eq, %25, %45 : vector<24x128xi32>
    %47 = arith.extui %46 : vector<24x128xi1> to vector<24x128xi32>
    %48 = arith.sitofp %47 : vector<24x128xi32> to vector<24x128xf32>
    %c296 = arith.constant 296 : index
    %c0_16 = arith.constant 0 : index
    %49 = vector.load %arg4[%c296, %c0_16] : memref<448x128xf32, #tpu.memory_space<vmem>>, vector<24x128xf32>
    tpu.vector_store %arg4[%c296, %c0_16], %48 {strides = array<i32>} : memref<448x128xf32, #tpu.memory_space<vmem>>, vector<24x128xf32>,
    %50 = tpu.iota {dimensions = array<i32: 0>} : vector<32x128xi32>
    %c8 = arith.constant 8 : index
    %c0_17 = arith.constant 0 : index
    %51 = vector.load %arg1[%c8, %c0_17] : memref<12x128xi32, #tpu.memory_space<vmem>>, vector<1x128xi32>
    %52 = vector.broadcast %51 : vector<1x128xi32> to vector<32x128xi32>
    %53 = arith.cmpi eq, %50, %52 : vector<32x128xi32>
    %54 = arith.extui %53 : vector<32x128xi1> to vector<32x128xi32>
    %55 = arith.sitofp %54 : vector<32x128xi32> to vector<32x128xf32>
    %c320 = arith.constant 320 : index
    %c0_18 = arith.constant 0 : index
    %56 = vector.load %arg4[%c320, %c0_18] : memref<448x128xf32, #tpu.memory_space<vmem>>, vector<32x128xf32>
    tpu.vector_store %arg4[%c320, %c0_18], %55 {strides = array<i32>} : memref<448x128xf32, #tpu.memory_space<vmem>>, vector<32x128xf32>,
    %c9 = arith.constant 9 : index
    %c0_19 = arith.constant 0 : index
    %57 = vector.load %arg1[%c9, %c0_19] : memref<12x128xi32, #tpu.memory_space<vmem>>, vector<1x128xi32>
    %58 = vector.broadcast %57 : vector<1x128xi32> to vector<32x128xi32>
    %59 = arith.cmpi eq, %50, %58 : vector<32x128xi32>
    %60 = arith.extui %59 : vector<32x128xi1> to vector<32x128xi32>
    %61 = arith.sitofp %60 : vector<32x128xi32> to vector<32x128xf32>
    %c352 = arith.constant 352 : index
    %c0_20 = arith.constant 0 : index
    %62 = vector.load %arg4[%c352, %c0_20] : memref<448x128xf32, #tpu.memory_space<vmem>>, vector<32x128xf32>
    tpu.vector_store %arg4[%c352, %c0_20], %61 {strides = array<i32>} : memref<448x128xf32, #tpu.memory_space<vmem>>, vector<32x128xf32>,
    %c10 = arith.constant 10 : index
    %c0_21 = arith.constant 0 : index
    %63 = vector.load %arg1[%c10, %c0_21] : memref<12x128xi32, #tpu.memory_space<vmem>>, vector<1x128xi32>
    %64 = vector.broadcast %63 : vector<1x128xi32> to vector<32x128xi32>
    %65 = arith.cmpi eq, %50, %64 : vector<32x128xi32>
    %66 = arith.extui %65 : vector<32x128xi1> to vector<32x128xi32>
    %67 = arith.sitofp %66 : vector<32x128xi32> to vector<32x128xf32>
    %c384 = arith.constant 384 : index
    %c0_22 = arith.constant 0 : index
    %68 = vector.load %arg4[%c384, %c0_22] : memref<448x128xf32, #tpu.memory_space<vmem>>, vector<32x128xf32>
    tpu.vector_store %arg4[%c384, %c0_22], %67 {strides = array<i32>} : memref<448x128xf32, #tpu.memory_space<vmem>>, vector<32x128xf32>,
    %c11 = arith.constant 11 : index
    %c0_23 = arith.constant 0 : index
    %69 = vector.load %arg1[%c11, %c0_23] : memref<12x128xi32, #tpu.memory_space<vmem>>, vector<1x128xi32>
    %70 = vector.broadcast %69 : vector<1x128xi32> to vector<32x128xi32>
    %71 = arith.cmpi eq, %50, %70 : vector<32x128xi32>
    %72 = arith.extui %71 : vector<32x128xi1> to vector<32x128xi32>
    %73 = arith.sitofp %72 : vector<32x128xi32> to vector<32x128xf32>
    %c416 = arith.constant 416 : index
    %c0_24 = arith.constant 0 : index
    %74 = vector.load %arg4[%c416, %c0_24] : memref<448x128xf32, #tpu.memory_space<vmem>>, vector<32x128xf32>
    tpu.vector_store %arg4[%c416, %c0_24], %73 {strides = array<i32>} : memref<448x128xf32, #tpu.memory_space<vmem>>, vector<32x128xf32>,
    %c0_25 = arith.constant 0 : index
    %c0_26 = arith.constant 0 : index
    %75 = vector.load %arg2[%c0_25, %c0_26] : memref<128x448xf32, #tpu.memory_space<vmem>>, vector<128x448xf32>
    %c0_27 = arith.constant 0 : index
    %c0_28 = arith.constant 0 : index
    %76 = vector.load %arg4[%c0_27, %c0_28] : memref<448x128xf32, #tpu.memory_space<vmem>>, vector<448x128xf32>
    %cst = arith.constant dense<0.000000e+00> : vector<128x128xf32>
    %77 = tpu.matmul %75, %76, %cst {dimension_numbers = #tpu.dot_dimension_numbers<[1], [0], [0], [1], [0, 0, 1, 1], [], []>} : vector<128x448xf32>, vector<448x128xf32>, vector<128x128xf32> -> vector<128x128xf32>
    %cst_29 = arith.constant 0.000000e+00 : f32
    %78 = vector.broadcast %cst_29 : f32 to vector<128x128xf32>
    %79 = arith.maximumf %77, %78 : vector<128x128xf32>
    %80 = tpu.transpose %79, [1, 0] : vector<128x128xf32> -> vector<128x128xf32>
    %c0_30 = arith.constant 0 : index
    %c0_31 = arith.constant 0 : index
    %81 = vector.load %arg3[%c0_30, %c0_31] : memref<128x128xf32, #tpu.memory_space<vmem>>, vector<128x128xf32>
    tpu.vector_store %arg3[%c0_30, %c0_31], %80 {strides = array<i32>} : memref<128x128xf32, #tpu.memory_space<vmem>>, vector<128x128xf32>,
    return
  }
  func.func @transform_0(%arg0: i32) -> (i32, i32) {
    %c0_i32 = arith.constant 0 : i32
    %c0_i32_0 = arith.constant 0 : i32
    return %c0_i32, %arg0 : i32, i32
  }
  func.func @transform_1(%arg0: i32) -> (i32, i32) {
    %c0_i32 = arith.constant 0 : i32
    %c0_i32_0 = arith.constant 0 : i32
    %c0_i32_1 = arith.constant 0 : i32
    return %c0_i32, %c0_i32_0 : i32, i32
  }
  func.func @transform_2(%arg0: i32) -> (i32, i32) {
    %c0_i32 = arith.constant 0 : i32
    %c0_i32_0 = arith.constant 0 : i32
    return %arg0, %c0_i32 : i32, i32
  }
}

</mosaic_0001>

<bundles_post_ra>
// kernel: tpu_custom_call.1
= control target key start
LH: loop header
LB: loop body
LE: loop exit
PB: predicated region body
PF: predicated region fallthrough
CT: control target
= control target key end

     0   :  { %v12_v0 = vlaneseq  ;;  %v949_v10 = vmov 1.0   ;;  %s1391_s0 = inlined_call_operand.vmem [shape: s32[12,128], index: 0, kind: input, shape index: {}]   ;;  %s1392_s1 = inlined_call_operand.vmem [shape: f32[128,448], index: 1, kind: input, shape index: {}]   ;;  %s1393_s2 = inlined_call_operand.hbm [shape: f32[128,128], index: 2, kind: output, shape index: {}]  }
   0x1   :  { %v911_v1 = vld [vmem:[%s1391_s0 + $0x9] ss:$0 sm:$0xff]  ;;  %v974_v2 = vld [vmem:[%s1391_s0 + $0x2] ss:$0 sm:$0xff]  ;;  %v981_v4 = vld [vmem:[%s1391_s0 + $0x5] ss:$0 sm:$0xff] }
   0x2   :  { %v976_v3 = vshrl.u32 %v12_v0, 7  ;;  %v914_v5 = vld [vmem:[%s1391_s0 + $0x4] ss:$0 sm:$0xff]  ;;  %v989_v6 = vld [vmem:[%s1391_s0 + $0x1] ss:$0 sm:$0xff] }
   0x3   :  { %v916_v12 = vld [vmem:[%s1391_s0 + $0x8] ss:$0 sm:$0xff]  ;;  %v1028_v15 = vld [vmem:[%s1391_s0 + $0x3] ss:$0 sm:$0xff]  ;;  %v919_v16 = vld [vmem:[%s1391_s0 + $0xb] ss:$0 sm:$0xff] }
   0x4   :  { %v992_v7 = vadd.s32 24, %v976_v3  ;;  %v995_v8 = vadd.s32 16, %v976_v3  ;;  %v998_v9 = vadd.s32 8, %v976_v3  ;;  %vm156_vm0 = vcmp.eq.s32.totalorder %v976_v3, %v981_v4 }
   0x5   :  { %867 = vmatpush.msk.msra.mxu1 %vm156_vm0, %v949_v10  ;;  %vm82_vm1 = vcmp.eq.s32.totalorder %v976_v3, %v974_v2  ;;  %v1006_v11 = vadd.s32 48, %v976_v3  ;;  %v1016_v13 = vadd.s32 40, %v976_v3  ;;  %v1023_v14 = vadd.s32 32, %v976_v3 }
   0x6   :  { %vm219_vm2 = vcmp.eq.s32.totalorder %v992_v7, %v911_v1  ;;  %vm218_vm3 = vcmp.eq.s32.totalorder %v995_v8, %v911_v1  ;;  %vm83_vm4 = vcmp.eq.s32.totalorder %v998_v9, %v974_v2  ;;  %vm144_vm5 = vcmp.eq.s32.totalorder %v995_v8, %v914_v5 }
   0x7   :  { %883 = vmatpush.msk.msra.mxu2 %vm219_vm2, %v949_v10  ;;  %851 = vmatpush.msk.msra.mxu0 %vm83_vm4, %v949_v10  ;;  %vm143_vm6 = vcmp.eq.s32.totalorder %v998_v9, %v914_v5  ;;  %vm217_vm7 = vcmp.eq.s32.totalorder %v998_v9, %v911_v1  ;;  %vm58_vm8 = vcmp.eq.s32.totalorder %v1006_v11, %v989_v6 }
   0x8   :  { %868 = vmatpush.msk.msra.mxu1 %vm144_vm5, %v949_v10  ;;  %vm142_vm9 = vcmp.eq.s32.totalorder %v976_v3, %v914_v5  ;;  %vm216_vm10 = vcmp.eq.s32.totalorder %v976_v3, %v911_v1  ;;  %vm57_vm11 = vcmp.eq.s32.totalorder %v1016_v13, %v989_v6  ;;  %vm118_vm12 = vcmp.eq.s32.totalorder %v1006_v11, %v1028_v15 }
   0x9   :  { %884 = vmatpush.msk.msra.mxu2 %vm218_vm3, %v949_v10  ;;  %852 = vmatpush.msk.msra.mxu0 %vm82_vm1, %v949_v10 }
   0xa   :  { %869 = vmatpush.msk.msra.mxu1 %vm143_vm6, %v949_v10 }
   0xb   :  { %885 = vmatpush.msk.msra.mxu2 %vm217_vm7, %v949_v10  ;;  %853 = vmatpush.msk.msra.mxu0 %vm58_vm8, %v949_v10 }
   0xc   :  { %7 = vsyncpa [#allocation4], 0  ;;  %vm201_vm13 = vcmp.eq.s32.totalorder %v992_v7, %v916_v12  ;;  %870 = vmatpush.msk.msra.mxu1 %vm142_vm9, %v949_v10  ;;  %vm56_vm14 = vcmp.eq.s32.totalorder %v1023_v14, %v989_v6  ;;  %vm255_vm15 = vcmp.eq.s32.totalorder %v992_v7, %v919_v16  ;;  %vm117_vm0 = vcmp.eq.s32.totalorder %v1016_v13, %v1028_v15  ;;  %v922_v17 = vld [vmem:[%s1391_s0 + $0xa] ss:$0 sm:$0xff]  ;;  %v918_v18 = vld [vmem:[%s1391_s0 + $0x7] ss:$0 sm:$0xff] }
   0xd   :  { %886 = vmatpush.msk.msra.mxu2 %vm216_vm10, %v949_v10  ;;  %854 = vmatpush.msk.msra.mxu0 %vm57_vm11, %v949_v10  ;;  %vm254_vm1 = vcmp.eq.s32.totalorder %v995_v8, %v919_v16  ;;  %vm200_vm2 = vcmp.eq.s32.totalorder %v995_v8, %v916_v12  ;;  %vm55_vm3 = vcmp.eq.s32.totalorder %v992_v7, %v989_v6  ;;  %v1094_v19 = vld [vmem:[%s1391_s0] ss:$0 sm:$0xff]  ;;  %v921_v20 = vld [vmem:[%s1391_s0 + $0x6] ss:$0 sm:$0xff]  ;;  %v271_v21 = vld [vmem:[%s1392_s1 + $0x18] sm:$0xff]  ;;  %s767_s19 = sshll.u32 %s1393_s2, 4  ;;  %s768_s19 = int_to_ptr.hbm [resolvable:$true] %s767_s19 }
   0xe   :  { %871 = vmatpush.msk.msra.mxu1 %vm118_vm12, %v949_v10  ;;  %899 = vmatpush.msk.msra.mxu3 %vm255_vm15, %v949_v10  ;;  %vm116_vm4 = vcmp.eq.s32.totalorder %v1023_v14, %v1028_v15  ;;  %vm253_vm5 = vcmp.eq.s32.totalorder %v998_v9, %v919_v16  ;;  %vm199_vm6 = vcmp.eq.s32.totalorder %v998_v9, %v916_v12  ;;  %v270_v22 = vld [vmem:[%s1392_s1 + $0x10] sm:$0xff]  ;;  %v268_v23 = vld [vmem:[%s1392_s1] sm:$0xff]  ;;  %v269_v24 = vld [vmem:[%s1392_s1 + $0x8] sm:$0xff]  ;;  %s951_s20 = smov 128   ;;  %s952_s21 = smov 8  }
   0xf   :  { %887 = vmatpush.msk.msra.mxu2 %vm201_vm13, %v949_v10  ;;  %855 = vmatpush.msk.msra.mxu0 %vm56_vm14, %v949_v10  ;;  %vm54_vm7 = vcmp.eq.s32.totalorder %v995_v8, %v989_v6  ;;  %vm115_vm8 = vcmp.eq.s32.totalorder %v992_v7, %v1028_v15  ;;  %vm252_vm9 = vcmp.eq.s32.totalorder %v976_v3, %v919_v16  ;;  %v275_v25 = vld [vmem:[%s1392_s1 + $0x38] sm:$0xff]  ;;  %v274_v26 = vld [vmem:[%s1392_s1 + $0x30] sm:$0xff]  ;;  %v272_v27 = vld [vmem:[%s1392_s1 + $0x20] sm:$0xff] }
  0x10   :  { %872 = vmatpush.msk.msra.mxu1 %vm117_vm0, %v949_v10  ;;  %900 = vmatpush.msk.msra.mxu3 %vm254_vm1, %v949_v10  ;;  %vm198_vm10 = vcmp.eq.s32.totalorder %v976_v3, %v916_v12  ;;  %vm53_vm11 = vcmp.eq.s32.totalorder %v998_v9, %v989_v6  ;;  %vm114_vm12 = vcmp.eq.s32.totalorder %v995_v8, %v1028_v15  ;;  %v273_v28 = vld [vmem:[%s1392_s1 + $0x28] sm:$0xff]  ;;  %v279_v29 = vld [vmem:[%s1392_s1 + $0x58] sm:$0xff]  ;;  %v278_v30 = vld [vmem:[%s1392_s1 + $0x50] sm:$0xff] }
  0x11   :  { %888 = vmatpush.msk.msra.mxu2 %vm200_vm2, %v949_v10  ;;  %856 = vmatpush.msk.msra.mxu0 %vm55_vm3, %v949_v10  ;;  %vm237_vm13 = vcmp.eq.s32.totalorder %v992_v7, %v922_v17  ;;  %vm186_vm14 = vcmp.eq.s32.totalorder %v995_v8, %v918_v18  ;;  %vm52_vm15 = vcmp.eq.s32.totalorder %v976_v3, %v989_v6  ;;  %v276_v31 = vld [vmem:[%s1392_s1 + $0x40] sm:$0xff]  ;;  %v277_v32 = vld [vmem:[%s1392_s1 + $0x48] sm:$0xff]  ;;  %v283_v33 = vld [vmem:[%s1392_s1 + $0x78] sm:$0xff] }
  0x12   :  { %873 = vmatpush.msk.msra.mxu1 %vm116_vm4, %v949_v10  ;;  %901 = vmatpush.msk.msra.mxu3 %vm253_vm5, %v949_v10  ;;  %vm113_vm0 = vcmp.eq.s32.totalorder %v998_v9, %v1028_v15  ;;  %vm236_vm1 = vcmp.eq.s32.totalorder %v995_v8, %v922_v17  ;;  %vm185_vm2 = vcmp.eq.s32.totalorder %v998_v9, %v918_v18  ;;  %v282_v34 = vld [vmem:[%s1392_s1 + $0x70] sm:$0xff]  ;;  %v280_v35 = vld [vmem:[%s1392_s1 + $0x60] sm:$0xff]  ;;  %v281_v36 = vld [vmem:[%s1392_s1 + $0x68] sm:$0xff] }
  0x13   :  { %889 = vmatpush.msk.msra.mxu2 %vm199_vm6, %v949_v10  ;;  %857 = vmatpush.msk.msra.mxu0 %vm54_vm7, %v949_v10  ;;  %vm28_vm3 = vcmp.eq.s32.totalorder %v1006_v11, %v1094_v19  ;;  %vm112_vm4 = vcmp.eq.s32.totalorder %v976_v3, %v1028_v15  ;;  %vm235_vm5 = vcmp.eq.s32.totalorder %v998_v9, %v922_v17  ;;  %v287_v37 = vld [vmem:[%s1392_s1 + $0x98] sm:$0xff]  ;;  %v286_v38 = vld [vmem:[%s1392_s1 + $0x90] sm:$0xff]  ;;  %v284_v39 = vld [vmem:[%s1392_s1 + $0x80] sm:$0xff] }
  0x14   :  { %874 = vmatpush.msk.msra.mxu1 %vm115_vm8, %v949_v10  ;;  %902 = vmatpush.msk.msra.mxu3 %vm252_vm9, %v949_v10  ;;  %vm184_vm6 = vcmp.eq.s32.totalorder %v976_v3, %v918_v18  ;;  %vm27_vm7 = vcmp.eq.s32.totalorder %v1016_v13, %v1094_v19  ;;  %vm88_vm8 = vcmp.eq.s32.totalorder %v1006_v11, %v974_v2  ;;  %v285_v40 = vld [vmem:[%s1392_s1 + $0x88] sm:$0xff]  ;;  %v291_v41 = vld [vmem:[%s1392_s1 + $0xb8] sm:$0xff]  ;;  %v290_v42 = vld [vmem:[%s1392_s1 + $0xb0] sm:$0xff] }
  0x15   :  { %890 = vmatpush.msk.msra.mxu2 %vm198_vm10, %v949_v10  ;;  %858 = vmatpush.msk.msra.mxu0 %vm53_vm11, %v949_v10  ;;  %vm234_vm9 = vcmp.eq.s32.totalorder %v976_v3, %v922_v17  ;;  %vm172_vm10 = vcmp.eq.s32.totalorder %v995_v8, %v921_v20  ;;  %vm26_vm11 = vcmp.eq.s32.totalorder %v1023_v14, %v1094_v19  ;;  %v288_v43 = vld [vmem:[%s1392_s1 + $0xa0] sm:$0xff]  ;;  %v289_v44 = vld [vmem:[%s1392_s1 + $0xa8] sm:$0xff]  ;;  %v295_v45 = vld [vmem:[%s1392_s1 + $0xd8] sm:$0xff] }
  0x16   :  { %875 = vmatpush.msk.msra.mxu1 %vm114_vm12, %v949_v10  ;;  %903 = vmatpush.msk.msra.mxu3 %vm237_vm13, %v949_v10  ;;  %vm87_vm12 = vcmp.eq.s32.totalorder %v1016_v13, %v974_v2  ;;  %vm388_vm13 = vcmask 523264   ;;  %v294_v46 = vld [vmem:[%s1392_s1 + $0xd0] sm:$0xff]  ;;  %v292_v47 = vld [vmem:[%s1392_s1 + $0xc0] sm:$0xff]  ;;  %v293_v48 = vld [vmem:[%s1392_s1 + $0xc8] sm:$0xff] }
  0x17   :  { %891 = vmatpush.msk.msra.mxu2 %vm186_vm14, %v949_v10  ;;  %859 = vmatpush.msk.msra.mxu0 %vm52_vm15, %v949_v10  ;;  %vm171_vm14 = vcmp.eq.s32.totalorder %v998_v9, %v921_v20  ;;  %vm25_vm15 = vcmp.eq.s32.totalorder %v992_v7, %v1094_v19  ;;  %v299_v49 = vld [vmem:[%s1392_s1 + $0xf8] sm:$0xff]  ;;  %v298_v50 = vld [vmem:[%s1392_s1 + $0xf0] sm:$0xff]  ;;  %v296_v51 = vld [vmem:[%s1392_s1 + $0xe0] sm:$0xff] }
  0x18   :  { %876 = vmatpush.msk.msra.mxu1 %vm113_vm0, %v949_v10  ;;  %904 = vmatpush.msk.msra.mxu3 %vm236_vm1, %v949_v10  ;;  %vm86_vm0 = vcmp.eq.s32.totalorder %v1023_v14, %v974_v2  ;;  %vm170_vm1 = vcmp.eq.s32.totalorder %v976_v3, %v921_v20  ;;  %v297_v52 = vld [vmem:[%s1392_s1 + $0xe8] sm:$0xff]  ;;  %v303_v53 = vld [vmem:[%s1392_s1 + $0x118] sm:$0xff]  ;;  %v302_v54 = vld [vmem:[%s1392_s1 + $0x110] sm:$0xff] }
  0x19   :  { %892 = vmatpush.msk.msra.mxu2 %vm185_vm2, %v949_v10  ;;  %860 = vmatpush.msk.msra.mxu0 %vm28_vm3, %v949_v10  ;;  %vm24_vm2 = vcmp.eq.s32.totalorder %v995_v8, %v1094_v19  ;;  %vm85_vm3 = vcmp.eq.s32.totalorder %v992_v7, %v974_v2  ;;  %v300_v55 = vld [vmem:[%s1392_s1 + $0x100] sm:$0xff]  ;;  %v301_v56 = vld [vmem:[%s1392_s1 + $0x108] sm:$0xff]  ;;  %v307_v57 = vld [vmem:[%s1392_s1 + $0x138] sm:$0xff] }
  0x1a   :  { %877 = vmatpush.msk.msra.mxu1 %vm112_vm4, %v949_v10  ;;  %905 = vmatpush.msk.msra.mxu3 %vm235_vm5, %v949_v10  ;;  %vm158_vm4 = vcmp.eq.s32.totalorder %v995_v8, %v981_v4  ;;  %vm23_vm5 = vcmp.eq.s32.totalorder %v998_v9, %v1094_v19  ;;  %v306_v58 = vld [vmem:[%s1392_s1 + $0x130] sm:$0xff]  ;;  %v304_v59 = vld [vmem:[%s1392_s1 + $0x120] sm:$0xff]  ;;  %v305_v60 = vld [vmem:[%s1392_s1 + $0x128] sm:$0xff] }
  0x1b   :  { %893 = vmatpush.msk.msra.mxu2 %vm184_vm6, %v949_v10  ;;  %861 = vmatpush.msk.msra.mxu0 %vm27_vm7, %v949_v10  ;;  %vm84_vm6 = vcmp.eq.s32.totalorder %v995_v8, %v974_v2  ;;  %vm157_vm7 = vcmp.eq.s32.totalorder %v998_v9, %v981_v4  ;;  %v311_v61 = vld [vmem:[%s1392_s1 + $0x158] sm:$0xff]  ;;  %v310_v62 = vld [vmem:[%s1392_s1 + $0x150] sm:$0xff]  ;;  %v308_v63 = vld [vmem:[%s1392_s1 + $0x140] sm:$0xff] }
  0x1c   :  { %878 = vmatpush.msk.msra.mxu1 %vm88_vm8, %v949_v10  ;;  %906 = vmatpush.msk.msra.mxu3 %vm234_vm9, %v949_v10  ;;  %vm22_vm8 = vcmp.eq.s32.totalorder %v976_v3, %v1094_v19  ;;  %v309_v0 = vld [vmem:[%s1392_s1 + $0x148] sm:$0xff]  ;;  %v315_v1 = vld [vmem:[%s1392_s1 + $0x178] sm:$0xff]  ;;  %v314_v2 = vld [vmem:[%s1392_s1 + $0x170] sm:$0xff] }
  0x1d   :  { %894 = vmatpush.msk.msra.mxu2 %vm172_vm10, %v949_v10  ;;  %862 = vmatpush.msk.msra.mxu0 %vm26_vm11, %v949_v10  ;;  %v312_v3 = vld [vmem:[%s1392_s1 + $0x160] sm:$0xff]  ;;  %v313_v4 = vld [vmem:[%s1392_s1 + $0x168] sm:$0xff]  ;;  %v319_v5 = vld [vmem:[%s1392_s1 + $0x198] sm:$0xff] }
  0x1e   :  { %879 = vmatpush.msk.msra.mxu1 %vm87_vm12, %v949_v10  ;;  %835 = vmatmul.msk.f32.vlgmr.msra.gmra.mxu3 %vm388_vm13, %v271_v21  ;;  %v318_v6 = vld [vmem:[%s1392_s1 + $0x190] sm:$0xff]  ;;  %v316_v7 = vld [vmem:[%s1392_s1 + $0x180] sm:$0xff]  ;;  %v317_v8 = vld [vmem:[%s1392_s1 + $0x188] sm:$0xff] }
  0x1f   :  { %895 = vmatpush.msk.msra.mxu2 %vm171_vm14, %v949_v10  ;;  %863 = vmatpush.msk.msra.mxu0 %vm25_vm15, %v949_v10  ;;  %v323_v9 = vld [vmem:[%s1392_s1 + $0x1b8] sm:$0xff]  ;;  %v320_v11 = vld [vmem:[%s1392_s1 + $0x1a0] sm:$0xff]  ;;  %v321_v12 = vld [vmem:[%s1392_s1 + $0x1a8] sm:$0xff] }
  0x20   :  { %880 = vmatpush.msk.msra.mxu1 %vm86_vm0, %v949_v10  ;;  %v327_v13 = vld [vmem:[%s1392_s1 + $0x1d8] sm:$0xff]  ;;  %v326_v14 = vld [vmem:[%s1392_s1 + $0x1d0] sm:$0xff]  ;;  %v324_v15 = vld [vmem:[%s1392_s1 + $0x1c0] sm:$0xff] }
  0x21   :  { %896 = vmatpush.msk.msra.mxu2 %vm170_vm1, %v949_v10  ;;  %864 = vmatpush.msk.msra.mxu0 %vm24_vm2, %v949_v10  ;;  %v325_v16 = vld [vmem:[%s1392_s1 + $0x1c8] sm:$0xff]  ;;  %v331_v17 = vld [vmem:[%s1392_s1 + $0x1f8] sm:$0xff]  ;;  %v330_v18 = vld [vmem:[%s1392_s1 + $0x1f0] sm:$0xff] }
  0x22   :  { %881 = vmatpush.msk.msra.mxu1 %vm85_vm3, %v949_v10  ;;  %v328_v19 = vld [vmem:[%s1392_s1 + $0x1e0] sm:$0xff]  ;;  %v329_v20 = vld [vmem:[%s1392_s1 + $0x1e8] sm:$0xff] }
  0x23   :  { %897 = vmatpush.msk.msra.mxu2 %vm158_vm4, %v949_v10  ;;  %865 = vmatpush.msk.msra.mxu0 %vm23_vm5, %v949_v10 }
  0x24   :  { %882 = vmatpush.msk.msra.mxu1 %vm84_vm6, %v949_v10 }
  0x25   :  { %898 = vmatpush.msk.msra.mxu2 %vm157_vm7, %v949_v10  ;;  %866 = vmatpush.msk.msra.mxu0 %vm22_vm8, %v949_v10  ;;  %v322_v10 = vld [vmem:[%s1392_s1 + $0x1b0] sm:$0xff]  ;;  %s950_s1 = smov [#allocation3]  }
  0x26   :  { %583 = vmatmul.f32.vlgmr.msra.gmra.mxu2 %v270_v22  ;;  %453 = vmatmul.f32.vlgmr.msra.gmra.mxu0 %v268_v23  ;;  %s765_s16 = sshll.u32 %s950_s1, 4  ;;  %s766_s16 = int_to_ptr.vmem [resolvable:$true] %s765_s16 }
  0x27   :  { %518 = vmatmul.f32.vlgmr.msra.gmra.mxu1 %v269_v24  ;;  %836 = vmatmul.msk.f32.gmra.mxu3 %vm388_vm13, %v275_v25 }
  0x2e   :  { %586 = vmatmul.f32.gmra.mxu2 %v274_v26  ;;  %456 = vmatmul.f32.gmra.mxu0 %v272_v27 }
  0x2f   :  { %521 = vmatmul.f32.gmra.mxu1 %v273_v28  ;;  %837 = vmatmul.msk.f32.gmra.mxu3 %vm388_vm13, %v279_v29 }
  0x36   :  { %589 = vmatmul.f32.gmra.mxu2 %v278_v30  ;;  %459 = vmatmul.f32.gmra.mxu0 %v276_v31 }
  0x37   :  { %524 = vmatmul.f32.gmra.mxu1 %v277_v32  ;;  %838 = vmatmul.msk.f32.gmra.mxu3 %vm388_vm13, %v283_v33 }
  0x3e   :  { %592 = vmatmul.f32.gmra.mxu2 %v282_v34  ;;  %462 = vmatmul.f32.gmra.mxu0 %v280_v35 }
  0x3f   :  { %527 = vmatmul.f32.gmra.mxu1 %v281_v36  ;;  %839 = vmatmul.msk.f32.gmra.mxu3 %vm388_vm13, %v287_v37 }
  0x46   :  { %595 = vmatmul.f32.gmra.mxu2 %v286_v38  ;;  %465 = vmatmul.f32.gmra.mxu0 %v284_v39 }
  0x47   :  { %530 = vmatmul.f32.gmra.mxu1 %v285_v40  ;;  %840 = vmatmul.msk.f32.gmra.mxu3 %vm388_vm13, %v291_v41 }
  0x4e   :  { %598 = vmatmul.f32.gmra.mxu2 %v290_v42  ;;  %468 = vmatmul.f32.gmra.mxu0 %v288_v43 }
  0x4f   :  { %533 = vmatmul.f32.gmra.mxu1 %v289_v44  ;;  %841 = vmatmul.msk.f32.gmra.mxu3 %vm388_vm13, %v295_v45 }
  0x56   :  { %601 = vmatmul.f32.gmra.mxu2 %v294_v46  ;;  %471 = vmatmul.f32.gmra.mxu0 %v292_v47 }
  0x57   :  { %536 = vmatmul.f32.gmra.mxu1 %v293_v48  ;;  %842 = vmatmul.msk.f32.gmra.mxu3 %vm388_vm13, %v299_v49 }
  0x5e   :  { %604 = vmatmul.f32.gmra.mxu2 %v298_v50  ;;  %474 = vmatmul.f32.gmra.mxu0 %v296_v51 }
  0x5f   :  { %539 = vmatmul.f32.gmra.mxu1 %v297_v52  ;;  %843 = vmatmul.msk.f32.gmra.mxu3 %vm388_vm13, %v303_v53 }
  0x66   :  { %607 = vmatmul.f32.gmra.mxu2 %v302_v54  ;;  %477 = vmatmul.f32.gmra.mxu0 %v300_v55 }
  0x67   :  { %542 = vmatmul.f32.gmra.mxu1 %v301_v56  ;;  %844 = vmatmul.msk.f32.gmra.mxu3 %vm388_vm13, %v307_v57 }
  0x6e   :  { %610 = vmatmul.f32.gmra.mxu2 %v306_v58  ;;  %480 = vmatmul.f32.gmra.mxu0 %v304_v59 }
  0x6f   :  { %545 = vmatmul.f32.gmra.mxu1 %v305_v60  ;;  %845 = vmatmul.msk.f32.gmra.mxu3 %vm388_vm13, %v311_v61 }
  0x76   :  { %613 = vmatmul.f32.gmra.mxu2 %v310_v62  ;;  %483 = vmatmul.f32.gmra.mxu0 %v308_v63 }
  0x77   :  { %548 = vmatmul.f32.gmra.mxu1 %v309_v0  ;;  %846 = vmatmul.msk.f32.gmra.mxu3 %vm388_vm13, %v315_v1 }
  0x7e   :  { %616 = vmatmul.f32.gmra.mxu2 %v314_v2  ;;  %486 = vmatmul.f32.gmra.mxu0 %v312_v3 }
  0x7f   :  { %551 = vmatmul.f32.gmra.mxu1 %v313_v4  ;;  %847 = vmatmul.msk.f32.gmra.mxu3 %vm388_vm13, %v319_v5 }
  0x86   :  { %619 = vmatmul.f32.gmra.mxu2 %v318_v6  ;;  %489 = vmatmul.f32.gmra.mxu0 %v316_v7 }
  0x87   :  { %554 = vmatmul.f32.gmra.mxu1 %v317_v8  ;;  %848 = vmatmul.msk.f32.gmra.mxu3 %vm388_vm13, %v323_v9 }
  0x8e   :  { %622 = vmatmul.f32.gmra.mxu2 %v322_v10  ;;  %492 = vmatmul.f32.gmra.mxu0 %v320_v11 }
  0x8f   :  { %557 = vmatmul.f32.gmra.mxu1 %v321_v12  ;;  %849 = vmatmul.msk.f32.gmra.mxu3 %vm388_vm13, %v327_v13 }
  0x96   :  { %625 = vmatmul.f32.gmra.mxu2 %v326_v14  ;;  %495 = vmatmul.f32.gmra.mxu0 %v324_v15 }
  0x97   :  { %560 = vmatmul.f32.gmra.mxu1 %v325_v16  ;;  %850 = vmatmul.msk.f32.gmra.mxu3 %vm388_vm13, %v331_v17 }
  0x9e   :  { %628 = vmatmul.f32.gmra.mxu2 %v330_v18  ;;  %498 = vmatmul.f32.gmra.mxu0 %v328_v19 }
  0x9f   :  { %563 = vmatmul.f32.gmra.mxu1 %v329_v20 }
  0xa1   :  { %v649_v21 = vpop.f32.mrf.mxu3 }
  0xa3   :  { %v454_v22 = vpop.f32.mrf.mxu0 }
  0xa4   :  { %v519_v23 = vpop.f32.mrf.mxu1 }
  0xa5   :  { %v520_v24 = vadd.f32 %v519_v23, %v454_v22 }
  0xa9   :  { %v584_v25 = vpop.f32.mrf.mxu2 }
  0xaa   :  { %v585_v26 = vadd.f32 %v584_v25, %v520_v24  ;;  %v652_v27 = vpop.f32.mrf.mxu3 }
  0xab   :  { %v457_v28 = vpop.f32.mrf.mxu0 }
  0xac   :  { %v522_v29 = vpop.f32.mrf.mxu1  ;;  %v650_v30 = vadd.f32 %v649_v21, %v585_v26 }
  0xad   :  { %v523_v31 = vadd.f32 %v522_v29, %v457_v28 }
  0xae   :  { %v697_v32 = vmax.f32 %v650_v30, 0.0 }
  0xb0   :  { %713 = vxpose.xlu0.b32.start [1/16] %v697_v32, 128 }
  0xb1   :  { %v587_v33 = vpop.f32.mrf.mxu2 }
  0xb2   :  { %v588_v34 = vadd.f32 %v587_v33, %v523_v31  ;;  %v655_v35 = vpop.f32.mrf.mxu3 }
  0xb3   :  { %v460_v36 = vpop.f32.mrf.mxu0 }
  0xb4   :  { %v653_v37 = vadd.f32 %v652_v27, %v588_v34  ;;  %v525_v38 = vpop.f32.mrf.mxu1 }
  0xb5   :  { %v526_v40 = vadd.f32 %v525_v38, %v460_v36 }
  0xb6   :  { %v698_v39 = vmax.f32 %v653_v37, 0.0 }
  0xb8   :  { %714 = vxpose.xlu0.b32.cont [2/16] %v698_v39, 128 }
  0xb9   :  { %v590_v41 = vpop.f32.mrf.mxu2 }
  0xba   :  { %v591_v42 = vadd.f32 %v590_v41, %v526_v40  ;;  %v658_v43 = vpop.f32.mrf.mxu3 }
  0xbb   :  { %v463_v44 = vpop.f32.mrf.mxu0 }
  0xbc   :  { %v656_v45 = vadd.f32 %v655_v35, %v591_v42  ;;  %v528_v46 = vpop.f32.mrf.mxu1 }
  0xbd   :  { %v529_v48 = vadd.f32 %v528_v46, %v463_v44 }
  0xbe   :  { %v699_v47 = vmax.f32 %v656_v45, 0.0 }
  0xc0   :  { %715 = vxpose.xlu0.b32.cont [3/16] %v699_v47, 128 }
  0xc1   :  { %v593_v49 = vpop.f32.mrf.mxu2 }
  0xc2   :  { %v594_v50 = vadd.f32 %v593_v49, %v529_v48  ;;  %v661_v51 = vpop.f32.mrf.mxu3 }
  0xc3   :  { %v466_v52 = vpop.f32.mrf.mxu0 }
  0xc4   :  { %v659_v53 = vadd.f32 %v658_v43, %v594_v50  ;;  %v531_v54 = vpop.f32.mrf.mxu1 }
  0xc5   :  { %v532_v56 = vadd.f32 %v531_v54, %v466_v52 }
  0xc6   :  { %v700_v55 = vmax.f32 %v659_v53, 0.0 }
  0xc8   :  { %716 = vxpose.xlu0.b32.cont [4/16] %v700_v55, 128 }
  0xc9   :  { %v596_v57 = vpop.f32.mrf.mxu2 }
  0xca   :  { %v597_v58 = vadd.f32 %v596_v57, %v532_v56  ;;  %v664_v59 = vpop.f32.mrf.mxu3 }
  0xcb   :  { %v469_v60 = vpop.f32.mrf.mxu0 }
  0xcc   :  { %v662_v61 = vadd.f32 %v661_v51, %v597_v58  ;;  %v534_v62 = vpop.f32.mrf.mxu1 }
  0xcd   :  { %v535_v0 = vadd.f32 %v534_v62, %v469_v60 }
  0xce   :  { %v701_v63 = vmax.f32 %v662_v61, 0.0 }
  0xd0   :  { %717 = vxpose.xlu0.b32.cont [5/16] %v701_v63, 128 }
  0xd1   :  { %v599_v1 = vpop.f32.mrf.mxu2 }
  0xd2   :  { %v600_v2 = vadd.f32 %v599_v1, %v535_v0  ;;  %v667_v3 = vpop.f32.mrf.mxu3 }
  0xd3   :  { %v472_v4 = vpop.f32.mrf.mxu0 }
  0xd4   :  { %v665_v5 = vadd.f32 %v664_v59, %v600_v2  ;;  %v537_v6 = vpop.f32.mrf.mxu1 }
  0xd5   :  { %v538_v8 = vadd.f32 %v537_v6, %v472_v4 }
  0xd6   :  { %v702_v7 = vmax.f32 %v665_v5, 0.0 }
  0xd8   :  { %718 = vxpose.xlu0.b32.cont [6/16] %v702_v7, 128 }
  0xd9   :  { %v602_v9 = vpop.f32.mrf.mxu2 }
  0xda   :  { %v603_v10 = vadd.f32 %v602_v9, %v538_v8  ;;  %v670_v11 = vpop.f32.mrf.mxu3 }
  0xdb   :  { %v475_v12 = vpop.f32.mrf.mxu0 }
  0xdc   :  { %v668_v13 = vadd.f32 %v667_v3, %v603_v10  ;;  %v540_v14 = vpop.f32.mrf.mxu1 }
  0xdd   :  { %v541_v16 = vadd.f32 %v540_v14, %v475_v12 }
  0xde   :  { %v703_v15 = vmax.f32 %v668_v13, 0.0 }
  0xe0   :  { %719 = vxpose.xlu0.b32.cont [7/16] %v703_v15, 128 }
  0xe1   :  { %v605_v17 = vpop.f32.mrf.mxu2 }
  0xe2   :  { %v606_v18 = vadd.f32 %v605_v17, %v541_v16  ;;  %v673_v19 = vpop.f32.mrf.mxu3 }
  0xe3   :  { %v478_v20 = vpop.f32.mrf.mxu0 }
  0xe4   :  { %v671_v21 = vadd.f32 %v670_v11, %v606_v18  ;;  %v543_v22 = vpop.f32.mrf.mxu1 }
  0xe5   :  { %v544_v24 = vadd.f32 %v543_v22, %v478_v20 }
  0xe6   :  { %v704_v23 = vmax.f32 %v671_v21, 0.0 }
  0xe8   :  { %720 = vxpose.xlu0.b32.cont [8/16] %v704_v23, 128 }
  0xe9   :  { %v608_v25 = vpop.f32.mrf.mxu2 }
  0xea   :  { %v609_v26 = vadd.f32 %v608_v25, %v544_v24  ;;  %v676_v27 = vpop.f32.mrf.mxu3 }
  0xeb   :  { %v481_v28 = vpop.f32.mrf.mxu0 }
  0xec   :  { %v674_v29 = vadd.f32 %v673_v19, %v609_v26  ;;  %v546_v30 = vpop.f32.mrf.mxu1 }
  0xed   :  { %v547_v32 = vadd.f32 %v546_v30, %v481_v28 }
  0xee   :  { %v705_v31 = vmax.f32 %v674_v29, 0.0 }
  0xf0   :  { %721 = vxpose.xlu0.b32.cont [9/16] %v705_v31, 128 }
  0xf1   :  { %v611_v33 = vpop.f32.mrf.mxu2 }
  0xf2   :  { %v612_v34 = vadd.f32 %v611_v33, %v547_v32  ;;  %v679_v35 = vpop.f32.mrf.mxu3 }
  0xf3   :  { %v484_v36 = vpop.f32.mrf.mxu0 }
  0xf4   :  { %v677_v37 = vadd.f32 %v676_v27, %v612_v34  ;;  %v549_v38 = vpop.f32.mrf.mxu1 }
  0xf5   :  { %v550_v40 = vadd.f32 %v549_v38, %v484_v36 }
  0xf6   :  { %v706_v39 = vmax.f32 %v677_v37, 0.0 }
  0xf8   :  { %722 = vxpose.xlu0.b32.cont [10/16] %v706_v39, 128 }
  0xf9   :  { %v614_v41 = vpop.f32.mrf.mxu2 }
  0xfa   :  { %v615_v42 = vadd.f32 %v614_v41, %v550_v40  ;;  %v682_v43 = vpop.f32.mrf.mxu3 }
  0xfb   :  { %v487_v44 = vpop.f32.mrf.mxu0 }
  0xfc   :  { %v680_v45 = vadd.f32 %v679_v35, %v615_v42  ;;  %v552_v46 = vpop.f32.mrf.mxu1 }
  0xfd   :  { %v553_v48 = vadd.f32 %v552_v46, %v487_v44 }
  0xfe   :  { %v707_v47 = vmax.f32 %v680_v45, 0.0 }
 0x100   :  { %723 = vxpose.xlu0.b32.cont [11/16] %v707_v47, 128 }
 0x101   :  { %v617_v49 = vpop.f32.mrf.mxu2 }
 0x102   :  { %v618_v50 = vadd.f32 %v617_v49, %v553_v48  ;;  %v685_v52 = vpop.f32.mrf.mxu3 }
 0x103   :  { %v490_v51 = vpop.f32.mrf.mxu0 }
 0x104   :  { %v683_v53 = vadd.f32 %v682_v43, %v618_v50  ;;  %v555_v54 = vpop.f32.mrf.mxu1 }
 0x105   :  { %v556_v56 = vadd.f32 %v555_v54, %v490_v51 }
 0x106   :  { %v708_v55 = vmax.f32 %v683_v53, 0.0 }
 0x108   :  { %724 = vxpose.xlu0.b32.cont [12/16] %v708_v55, 128 }
 0x109   :  { %v620_v57 = vpop.f32.mrf.mxu2 }
 0x10a   :  { %v621_v58 = vadd.f32 %v620_v57, %v556_v56  ;;  %v688_v62 = vpop.f32.mrf.mxu3 }
 0x10b   :  { %v493_v59 = vpop.f32.mrf.mxu0 }
 0x10c   :  { %v686_v60 = vadd.f32 %v685_v52, %v621_v58  ;;  %v558_v61 = vpop.f32.mrf.mxu1 }
 0x10d   :  { %v559_v0 = vadd.f32 %v558_v61, %v493_v59 }
 0x10e   :  { %v709_v63 = vmax.f32 %v686_v60, 0.0 }
 0x110   :  { %725 = vxpose.xlu0.b32.cont [13/16] %v709_v63, 128 }
 0x111   :  { %v623_v1 = vpop.f32.mrf.mxu2 }
 0x112   :  { %v624_v2 = vadd.f32 %v623_v1, %v559_v0  ;;  %v691_v8 = vpop.f32.mrf.mxu3 }
 0x113   :  { %v496_v3 = vpop.f32.mrf.mxu0 }
 0x114   :  { %v689_v4 = vadd.f32 %v688_v62, %v624_v2  ;;  %v561_v5 = vpop.f32.mrf.mxu1 }
 0x115   :  { %v562_v7 = vadd.f32 %v561_v5, %v496_v3 }
 0x116   :  { %v710_v6 = vmax.f32 %v689_v4, 0.0 }
 0x118   :  { %726 = vxpose.xlu0.b32.cont [14/16] %v710_v6, 128 }
 0x119   :  { %v626_v9 = vpop.f32.mrf.mxu2 }
 0x11a   :  { %v627_v10 = vadd.f32 %v626_v9, %v562_v7  ;;  %v694_v17 = vpop.f32.mrf.mxu3 }
 0x11b   :  { %v499_v11 = vpop.f32.mrf.mxu0 }
 0x11c   :  { %v692_v12 = vadd.f32 %v691_v8, %v627_v10  ;;  %v564_v13 = vpop.f32.mrf.mxu1 }
 0x11d   :  { %v565_v15 = vadd.f32 %v564_v13, %v499_v11 }
 0x11e   :  { %v711_v14 = vmax.f32 %v692_v12, 0.0 }
 0x120   :  { %727 = vxpose.xlu0.b32.cont [15/16] %v711_v14, 128 }
 0x121   :  { %v629_v16 = vpop.f32.mrf.mxu2 }
 0x122   :  { %v630_v18 = vadd.f32 %v629_v16, %v565_v15 }
 0x124   :  { %v695_v19 = vadd.f32 %v694_v17, %v630_v18 }
 0x126   :  { %v712_v20 = vmax.f32 %v695_v19, 0.0 }
 0x128   :  { %728 = vxpose.xlu0.b32.end [16/16] %v712_v20, 128 }
 0x154   :  { %v729_v21 = vpop.trf.xlu0 }
 0x155   :  { %745 = vst [vmem:[#allocation3] sm:$0xff] %v729_v21 }
 0x15c   :  { %v730_v22 = vpop.trf.xlu0 }
 0x15d   :  { %746 = vst [vmem:[#allocation3 + $0x8] sm:$0xff] %v730_v22 }
 0x164   :  { %v731_v23 = vpop.trf.xlu0 }
 0x165   :  { %747 = vst [vmem:[#allocation3 + $0x10] sm:$0xff] %v731_v23 }
 0x16c   :  { %v732_v24 = vpop.trf.xlu0 }
 0x16d   :  { %748 = vst [vmem:[#allocation3 + $0x18] sm:$0xff] %v732_v24 }
 0x174   :  { %v733_v25 = vpop.trf.xlu0 }
 0x175   :  { %749 = vst [vmem:[#allocation3 + $0x20] sm:$0xff] %v733_v25 }
 0x17c   :  { %v734_v26 = vpop.trf.xlu0 }
 0x17d   :  { %750 = vst [vmem:[#allocation3 + $0x28] sm:$0xff] %v734_v26 }
 0x184   :  { %v735_v27 = vpop.trf.xlu0 }
 0x185   :  { %751 = vst [vmem:[#allocation3 + $0x30] sm:$0xff] %v735_v27 }
 0x18c   :  { %v736_v28 = vpop.trf.xlu0 }
 0x18d   :  { %752 = vst [vmem:[#allocation3 + $0x38] sm:$0xff] %v736_v28 }
 0x194   :  { %v737_v29 = vpop.trf.xlu0 }
 0x195   :  { %753 = vst [vmem:[#allocation3 + $0x40] sm:$0xff] %v737_v29 }
 0x19c   :  { %v738_v30 = vpop.trf.xlu0 }
 0x19d   :  { %754 = vst [vmem:[#allocation3 + $0x48] sm:$0xff] %v738_v30 }
 0x1a4   :  { %v739_v31 = vpop.trf.xlu0 }
 0x1a5   :  { %755 = vst [vmem:[#allocation3 + $0x50] sm:$0xff] %v739_v31 }
 0x1ac   :  { %v740_v32 = vpop.trf.xlu0 }
 0x1ad   :  { %756 = vst [vmem:[#allocation3 + $0x58] sm:$0xff] %v740_v32 }
 0x1b4   :  { %v741_v33 = vpop.trf.xlu0 }
 0x1b5   :  { %757 = vst [vmem:[#allocation3 + $0x60] sm:$0xff] %v741_v33 }
 0x1bc   :  { %v742_v34 = vpop.trf.xlu0 }
 0x1bd   :  { %758 = vst [vmem:[#allocation3 + $0x68] sm:$0xff] %v742_v34 }
 0x1c4   :  { %v743_v35 = vpop.trf.xlu0 }
 0x1c5   :  { %759 = vst [vmem:[#allocation3 + $0x70] sm:$0xff] %v743_v35 }
 0x1cc   :  { %v744_v36 = vpop.trf.xlu0 }
 0x1cd   :  { %760 = vst [vmem:[#allocation3 + $0x78] sm:$0xff] %v744_v36 }
 0x1ce   :  { %773 = dma.vmem_to_hbm [thread:$0]  %s766_s16, 2048, %s768_s19, [#allocation4], %s951_s20, %s951_s20, %s952_s21  }
 0x1cf   :  { %947 = dma.done.wait [#allocation4], 2048  }
 0x1d0   :  { %948 = vsyncadd [#allocation4], 4294965248 }
 0x1d1   :  { %778 = vsyncpa [#allocation4], 1 }

</bundles_post_ra>
